<compile_context>
chip_gen: v6e
topology: v6e:2x2x1
jax: 0.10.0
libtpu: 0.0.40
codegen_flags: <defaults>
</compile_context>

<pallas_src>
import functools

import jax
import jax.numpy as jnp
from jax import lax
from jax.experimental import pallas as pl
from jax.experimental.pallas import tpu as pltpu

BLOCK_SIZE = 16        # max sequence length (causal mask size)
EMBEDDING_DIM = 288
HEAD_SIZE = 32
DROPOUT_P = 0.2        # unused at inference (eval mode)
MASK_NEG = -1e30       # large finite negative instead of -inf (NaN-safe)


def _head_kernel(x_ref, w_ref, mask_ref, o_ref, *, head_size):
    """One causal self-attention head over all B*T rows in a single slab.

    x_ref:    (N, C)   bf16   N = B*T, all batch rows flattened
    w_ref:    (C, 3H)  bf16   fused [q*scale | k | v] projection weights
    mask_ref: (N, N)   f32    additive block-diagonal causal mask (0 allowed / -1e30 masked)
    o_ref:    (N, H)   f32
    """
    H = head_size

    # Fused QKV projection — the only large matmul (N x C x 3H); bf16 operands, f32 acc.
    qkv = jnp.dot(x_ref[...], w_ref[...], preferred_element_type=jnp.float32)  # (N, 3H)

    # One-shot lane slices over all rows (scale already folded into the q weights).
    q = qkv[:, 0:H]
    k = qkv[:, H:2 * H]
    v = qkv[:, 2 * H:3 * H]

    # Scores for every (row, row) pair at once; contract on head dim (no explicit k.T).
    s = lax.dot_general(
        q.astype(jnp.bfloat16), k.astype(jnp.bfloat16),
        dimension_numbers=(((1,), (1,)), ((), ())),
        preferred_element_type=jnp.float32,
    )                                      # (N, N) f32
    s = s + mask_ref[...]                  # block-diagonal causal mask (additive)

    # Numerically stable softmax in f32; exact division (cheap at (N, 1)).
    s_max = jnp.max(s, axis=-1, keepdims=True)
    p = jnp.exp(s - s_max)
    attn = p / jnp.sum(p, axis=-1, keepdims=True)

    # dropout: identity in eval mode
    out = jnp.dot(attn.astype(jnp.bfloat16), v.astype(jnp.bfloat16),
                  preferred_element_type=jnp.float32)                 # (N, H)
    o_ref[...] = out.astype(o_ref.dtype)   # single full-tile store


def make_head(w_key, w_query, w_value, batch_size, seq_len):
    """Build the Head forward fn. w_* are nn.Linear.weight shaped (head_size, C).

    All per-call prep (weight fusion/transpose, scale folding, mask construction) is
    done here exactly once; the returned callable only reshapes, casts, and launches
    the single-step Pallas kernel.
    """
    H, C = w_key.shape
    B, T = batch_size, seq_len
    N = B * T
    scale = float(C) ** -0.5   # NOTE: module scales by embedding dim C, not head_size

    # Fused [q*scale | k | v] projection in bf16 (MXU-native; halves the weight DMA).
    w_qkv = jnp.concatenate(
        [w_query.T * scale, w_key.T, w_value.T], axis=1).astype(jnp.bfloat16)

    # Additive block-diagonal causal mask over the flattened (B*T) rows:
    # allowed iff same batch AND key position <= query position.
    idx = jnp.arange(N)
    bid = idx // T
    pos = idx % T
    allowed = (bid[:, None] == bid[None, :]) & (pos[None, :] <= pos[:, None])
    mask = jnp.where(allowed, 0.0, MASK_NEG).astype(jnp.float32)

    kernel = functools.partial(_head_kernel, head_size=H)

    call = pl.pallas_call(
        kernel,
        out_shape=jax.ShapeDtypeStruct((N, H), jnp.float32),
        grid_spec=pltpu.PrefetchScalarGridSpec(
            num_scalar_prefetch=0,
            grid=(1,),   # whole problem is one ~150 KB VMEM slab: single step, no pipelining
            in_specs=[
                pl.BlockSpec((N, C), lambda i: (0, 0)),
                pl.BlockSpec((C, 3 * H), lambda i: (0, 0)),
                pl.BlockSpec((N, N), lambda i: (0, 0)),
            ],
            out_specs=pl.BlockSpec((N, H), lambda i: (0, 0)),
        ),
        compiler_params=pltpu.CompilerParams(
            dimension_semantics=("arbitrary",)),
    )

    @jax.jit
    def forward(x):
        # x: (B, T, C) f32  ->  (B, T, H) f32
        x2d = x.reshape(N, C).astype(jnp.bfloat16)
        out2d = call(x2d, w_qkv, mask)
        return out2d.reshape(B, T, H)

    return forward


def head_reference(x, w_key, w_query, w_value):
    """Plain-JAX f32 reference mirroring the PyTorch forward (eval mode)."""
    B, T, C = x.shape
    k = jnp.einsum("btc,hc->bth", x, w_key)
    q = jnp.einsum("btc,hc->bth", x, w_query)
    v = jnp.einsum("btc,hc->bth", x, w_value)
    w = jnp.einsum("bth,bsh->bts", q, k) * (C ** -0.5)
    tril = jnp.tril(jnp.ones((T, T), dtype=bool))
    w = jnp.where(tril[None, :, :], w, -jnp.inf)
    w = jax.nn.softmax(w, axis=-1)
    return jnp.einsum("bts,bsh->bth", w, v)


if __name__ == "__main__":
    key = jax.random.PRNGKey(0)
    kx, kk, kq, kv = jax.random.split(key, 4)

    B, T, C, H = 2, BLOCK_SIZE, EMBEDDING_DIM, HEAD_SIZE

    x = jax.random.normal(kx, (B, T, C), dtype=jnp.float32)
    # nn.Linear(embedding_dim, head_size, bias=False).weight has shape (H, C)
    w_key = jax.random.normal(kk, (H, C), dtype=jnp.float32) * (C ** -0.5)
    w_query = jax.random.normal(kq, (H, C), dtype=jnp.float32) * (C ** -0.5)
    w_value = jax.random.normal(kv, (H, C), dtype=jnp.float32) * (C ** -0.5)

    head = make_head(w_key, w_query, w_value, batch_size=B, seq_len=T)

    out = head(x)
    out = jax.block_until_ready(out)

    ref = head_reference(x, w_key, w_query, w_value)
    assert out.shape == (B, T, H)
    # tolerance reflects bf16 MXU operands (f32 accumulation); softmax itself is exact f32
    assert jnp.allclose(out, ref, atol=2e-2, rtol=2e-2), "mismatch vs reference"

    print("KERNEL_OK")
</pallas_src>

<mosaic_0001>
module attributes {stable_mosaic.version = 11 : i64} {
  func.func @_head_kernel(%arg0: i32, %arg1: memref<32x288xbf16, #tpu.memory_space<vmem>>, %arg2: memref<288x96xbf16, #tpu.memory_space<vmem>>, %arg3: memref<32x32xf32, #tpu.memory_space<vmem>>, %arg4: memref<32x32xf32, #tpu.memory_space<vmem>>) attributes {dimension_semantics = [#tpu.dimension_semantics<arbitrary>], iteration_bounds = array<i64: 1>, scalar_prefetch = 0 : i64, scratch_operands = 0 : i64, tpu.core_type = #tpu.core_type<tc>, window_params = [{pipeline_mode = #tpu.pipeline_mode<synchronous>, transform_indices = @transform_0, window_bounds = array<i64: 32, 288>}, {pipeline_mode = #tpu.pipeline_mode<synchronous>, transform_indices = @transform_1, window_bounds = array<i64: 288, 96>}, {pipeline_mode = #tpu.pipeline_mode<synchronous>, transform_indices = @transform_2, window_bounds = array<i64: 32, 32>}, {pipeline_mode = #tpu.pipeline_mode<synchronous>, transform_indices = @transform_3, window_bounds = array<i64: 32, 32>}]} {
    %c0 = arith.constant 0 : index
    %c0_0 = arith.constant 0 : index
    %0 = vector.load %arg1[%c0, %c0_0] : memref<32x288xbf16, #tpu.memory_space<vmem>>, vector<32x288xbf16>
    %c0_1 = arith.constant 0 : index
    %c0_2 = arith.constant 0 : index
    %1 = vector.load %arg2[%c0_1, %c0_2] : memref<288x96xbf16, #tpu.memory_space<vmem>>, vector<288x96xbf16>
    %cst = arith.constant dense<0.000000e+00> : vector<32x96xf32>
    %2 = tpu.matmul %0, %1, %cst {dimension_numbers = #tpu.dot_dimension_numbers<[1], [0], [0], [1], [0, 0, 1, 1], [], []>} : vector<32x288xbf16>, vector<288x96xbf16>, vector<32x96xf32> -> vector<32x96xf32>
    %3 = vector.extract_strided_slice %2 {offsets = [0, 0], sizes = [32, 32], strides = [1, 1]} : vector<32x96xf32> to vector<32x32xf32>
    %4 = vector.extract_strided_slice %2 {offsets = [0, 32], sizes = [32, 32], strides = [1, 1]} : vector<32x96xf32> to vector<32x32xf32>
    %5 = vector.extract_strided_slice %2 {offsets = [0, 64], sizes = [32, 32], strides = [1, 1]} : vector<32x96xf32> to vector<32x32xf32>
    %6 = arith.truncf %3 : vector<32x32xf32> to vector<32x32xbf16>
    %7 = arith.truncf %4 : vector<32x32xf32> to vector<32x32xbf16>
    %cst_3 = arith.constant dense<0.000000e+00> : vector<32x32xf32>
    %8 = tpu.matmul %6, %7, %cst_3 {dimension_numbers = #tpu.dot_dimension_numbers<[1], [1], [0], [0], [0, 0, 1, 0], [], []>} : vector<32x32xbf16>, vector<32x32xbf16>, vector<32x32xf32> -> vector<32x32xf32>
    %c0_4 = arith.constant 0 : index
    %c0_5 = arith.constant 0 : index
    %9 = vector.load %arg3[%c0_4, %c0_5] : memref<32x32xf32, #tpu.memory_space<vmem>>, vector<32x32xf32>
    %10 = arith.addf %8, %9 : vector<32x32xf32>
    %cst_6 = arith.constant dense<0xFF800000> : vector<32xf32>
    %11 = vector.multi_reduction <maximumf>, %10, %cst_6 [1] : vector<32x32xf32> to vector<32xf32>
    %12 = vector.shape_cast %11 : vector<32xf32> to vector<32x1xf32>
    %13 = vector.broadcast %12 : vector<32x1xf32> to vector<32x32xf32>
    %14 = arith.subf %10, %13 : vector<32x32xf32>
    %15 = math.exp %14 : vector<32x32xf32>
    %cst_7 = arith.constant dense<0.000000e+00> : vector<32xf32>
    %16 = vector.multi_reduction <add>, %15, %cst_7 [1] : vector<32x32xf32> to vector<32xf32>
    %17 = vector.shape_cast %16 : vector<32xf32> to vector<32x1xf32>
    %18 = vector.broadcast %17 : vector<32x1xf32> to vector<32x32xf32>
    %19 = arith.divf %15, %18 : vector<32x32xf32>
    %20 = arith.truncf %19 : vector<32x32xf32> to vector<32x32xbf16>
    %21 = arith.truncf %5 : vector<32x32xf32> to vector<32x32xbf16>
    %cst_8 = arith.constant dense<0.000000e+00> : vector<32x32xf32>
    %22 = tpu.matmul %20, %21, %cst_8 {dimension_numbers = #tpu.dot_dimension_numbers<[1], [0], [0], [1], [0, 0, 1, 1], [], []>} : vector<32x32xbf16>, vector<32x32xbf16>, vector<32x32xf32> -> vector<32x32xf32>
    %c0_9 = arith.constant 0 : index
    %c0_10 = arith.constant 0 : index
    %23 = vector.load %arg4[%c0_9, %c0_10] : memref<32x32xf32, #tpu.memory_space<vmem>>, vector<32x32xf32>
    tpu.vector_store %arg4[%c0_9, %c0_10], %22 {strides = array<i32>} : memref<32x32xf32, #tpu.memory_space<vmem>>, vector<32x32xf32>,
    return
  }
  func.func @transform_0(%arg0: i32) -> (i32, i32) {
    %c0_i32 = arith.constant 0 : i32
    %c0_i32_0 = arith.constant 0 : i32
    %c0_i32_1 = arith.constant 0 : i32
    return %c0_i32, %c0_i32_0 : i32, i32
  }
  func.func @transform_1(%arg0: i32) -> (i32, i32) {
    %c0_i32 = arith.constant 0 : i32
    %c0_i32_0 = arith.constant 0 : i32
    %c0_i32_1 = arith.constant 0 : i32
    return %c0_i32, %c0_i32_0 : i32, i32
  }
  func.func @transform_2(%arg0: i32) -> (i32, i32) {
    %c0_i32 = arith.constant 0 : i32
    %c0_i32_0 = arith.constant 0 : i32
    %c0_i32_1 = arith.constant 0 : i32
    return %c0_i32, %c0_i32_0 : i32, i32
  }
  func.func @transform_3(%arg0: i32) -> (i32, i32) {
    %c0_i32 = arith.constant 0 : i32
    %c0_i32_0 = arith.constant 0 : i32
    %c0_i32_1 = arith.constant 0 : i32
    return %c0_i32, %c0_i32_0 : i32, i32
  }
}

</mosaic_0001>

<bundles_post_ra>
// kernel: forward.1
= control target key start
LH: loop header
LB: loop body
LE: loop exit
PB: predicated region body
PF: predicated region fallthrough
CT: control target
= control target key end

     0   :  { %8 = vsyncpa [#allocation3], 0  ;;  %s838_s0 = inlined_call_operand.vmem [shape: bf16[32,288], index: 0, kind: input, shape index: {}]   ;;  %s839_s1 = inlined_call_operand.vmem [shape: bf16[288,96], index: 1, kind: input, shape index: {}]   ;;  %s840_s2 = inlined_call_operand.hbm [shape: f32[32,32], index: 2, kind: input, shape index: {}]   ;;  %s841_s3 = inlined_call_operand.hbm [shape: f32[32,32], index: 3, kind: output, shape index: {}]  }
   0x1   :  { %9 = vsyncpa [#allocation4], 0  ;;  %s706_s12 = smov [#allocation2]  }
   0x2   :  { %s19_s13 = sshll.u32 %s706_s12, 4  ;;  %s20_s13 = int_to_ptr.vmem [resolvable:$true] %s19_s13 }
   0x3   :  { %s670_s14 = scalar_lea.vmem %s20_s13, 512  ;;  %p675_p1 = scmp.lt.s32.totalorder %s20_s13, %s20_s13 }
   0x4   :  { %p671_p0 = scmp.ne.s32.totalorder %s20_s13, %s670_s14  ;;  %p676_p2 = scmp.lt.s32.totalorder %s670_s14, %s670_s14 }
   0x6   :  { %p677_p3 = por %p676_p2, %p675_p1 }
   0x8   :  { %p678_p4 = pnand %p677_p3, %p671_p0 }
   0xa   :  { %681 = shalt.err (!%p678_p4)
}
   0xb   :  { %s707_s15 = smov 128   ;;  %s708_s16 = smov 8  }
   0xc   :  { %25 = dma.hbm_to_vmem [thread:$0]  %s840_s2, 512, %s20_s13, [#allocation3], %s707_s15, %s707_s15, %s708_s16  }
   0xd   :  { %702 = dma.done.wait [#allocation3], 512  }
   0xe   :  { %703 = vsyncadd [#allocation3], 4294966784  ;;  %v620_v0 = vld [vmem:[%s839_s1 + $0x78] sm:$0xff]   ;;  %v622_v2 = vld [vmem:[%s839_s1 + $0x70] sm:$0xff]   ;;  %vm212_vm0 = vcmask 261120   ;;  %s711_s13 = smov [#allocation5]  }
   0xf   :  { %v621_v1 = vld [vmem:[%s839_s1 + $0x38] sm:$0xff]   ;;  %548 = vmatprep.subr.bf16.mxu0 %v620_v0  ;;  %v623_v3 = vld [vmem:[%s839_s1 + $0x30] sm:$0xff]   ;;  %v624_v4 = vld [vmem:[%s839_s1 + $0x68] sm:$0xff]   ;;  %s506_s14 = sshll.u32 %s711_s13, 4  ;;  %s507_s14 = int_to_ptr.vmem [resolvable:$true] %s506_s14 }
  0x10   :  { %549 = vmatpush3.bf16.msra.mxu0 %v621_v1  ;;  %v625_v5 = vld [vmem:[%s839_s1 + $0x28] sm:$0xff]   ;;  %v626_v6 = vld [vmem:[%s839_s1 + $0x60] sm:$0xff]   ;;  %v628_v8 = vld [vmem:[%s839_s1 + $0x58] sm:$0xff]   ;;  %s682_s17 = scalar_lea.vmem %s507_s14, 512  ;;  %p687_p6 = scmp.lt.s32.totalorder %s507_s14, %s507_s14 }
  0x11   :  { %550 = vmatprep.subr.bf16.mxu0 %v622_v2  ;;  %v627_v7 = vld [vmem:[%s839_s1 + $0x20] sm:$0xff]   ;;  %v634_v9 = vld [vmem:[%s839_s1 + $0x88] sm:$0xff]   ;;  %v629_v10 = vld [vmem:[%s839_s1 + $0x18] sm:$0xff]   ;;  %p683_p5 = scmp.ne.s32.totalorder %s507_s14, %s682_s17  ;;  %p688_p7 = scmp.lt.s32.totalorder %s682_s17, %s682_s17 }
  0x12   :  { %v630_v11 = vld [vmem:[%s839_s1 + $0x50] sm:$0xff]   ;;  %588 = vmatprep.subr.bf16.mxu1 %v634_v9  ;;  %v637_v13 = vld [vmem:[%s839_s1 + $0x80] sm:$0xff]   ;;  %v632_v14 = vld [vmem:[%s839_s1 + $0x48] sm:$0xff]  }
  0x13   :  { %v631_v12 = vld [vmem:[%s839_s1 + $0x10] sm:$0xff]   ;;  %589 = vmatpush3.bf16.msra.mxu1 %v634_v9  ;;  %v642_v17 = vld [vmem:[%s838_s0 + $0x20] ss:$12 sps:$4 sm:$0xff]   ;;  %v643_v22 = vld [vmem:[%s838_s0 + $0x1c] ss:$12 sps:$4 sm:$0xff]   ;;  %p689_p8 = por %p688_p7, %p687_p6 }
  0x14   :  { %551 = vmatpush3.bf16.msra.mxu0 %v623_v3  ;;  %590 = vmatprep.subr.bf16.mxu1 %v637_v13  ;;  %v640_v15 = vld [vmem:[%s838_s0 + $0x4] ss:$12 sps:$4 sm:$0xff]   ;;  %v641_v16 = vld [vmem:[%s838_s0 + $0x8] ss:$12 sps:$4 sm:$0xff]   ;;  %v638_v21 = vld [vmem:[%s838_s0] ss:$12 sps:$4 sm:$0xff]  }
  0x15   :  { %552 = vmatprep.subr.bf16.mxu0 %v624_v4  ;;  %251 = vmatprep.mubr.bf16.mxu0 %v640_v15  ;;  %v633_v18 = vld [vmem:[%s839_s1 + $0x8] sm:$0xff]   ;;  %v635_v19 = vld [vmem:[%s839_s1 + $0x40] sm:$0xff]   ;;  %v321_v50 = vld [vmem:[#allocation2 + $0x10] sm:$0xff]  ;;  %p690_p9 = pnand %p689_p8, %p683_p5 }
  0x16   :  { %592 = vmatprep.mubr.msk.bf16.mxu1 %vm212_vm0, %v641_v16  ;;  %v636_v20 = vld [vmem:[%s839_s1] sm:$0xff]   ;;  %v320_v58 = vld [vmem:[#allocation2 + $0x8] sm:$0xff]  ;;  %v322_v60 = vld [vmem:[#allocation2 + $0x18] sm:$0xff]  ;;  %s710_s1 = smov 64  }
  0x17   :  { %591 = vmatpush3.bf16.msra.mxu1 %v637_v13  ;;  %v645_v23 = vld [vmem:[%s838_s0 + $0x18] ss:$12 sps:$4 sm:$0xff]   ;;  %s709_s0 = smov 96  }
  0x18   :  { %553 = vmatpush3.bf16.msra.mxu0 %v625_v5  ;;  %v319_v52 = vld [vmem:[#allocation2] sm:$0xff] }
  0x19   :  { %554 = vmatprep.subr.bf16.mxu0 %v626_v6 }
  0x1a   :  { %593 = vmatmul.mubr.msk.bf16.vlgmr.msra.gmra.mxu1 %vm212_vm0, %v642_v17 }
  0x1c   :  { %555 = vmatpush3.bf16.msra.mxu0 %v627_v7 }
  0x1d   :  { %556 = vmatprep.subr.bf16.mxu0 %v628_v8 }
  0x20   :  { %557 = vmatpush3.bf16.msra.mxu0 %v629_v10 }
  0x21   :  { %558 = vmatprep.subr.bf16.mxu0 %v630_v11 }
  0x24   :  { %559 = vmatpush3.bf16.msra.mxu0 %v631_v12 }
  0x25   :  { %560 = vmatprep.subr.bf16.mxu0 %v632_v14 }
  0x28   :  { %561 = vmatpush3.bf16.msra.mxu0 %v633_v18 }
  0x29   :  { %562 = vmatprep.subr.bf16.mxu0 %v635_v19 }
  0x2c   :  { %563 = vmatpush3.bf16.msra.mxu0 %v636_v20 }
  0x2f   :  { %252 = vmatmul.mubr.bf16.vlgmr.msra.gmra.mxu0 %v638_v21 }
  0x30   :  { %259 = vmatprep.mubr.bf16.mxu0 %v643_v22 }
  0x37   :  { %260 = vmatmul.mubr.bf16.gmra.mxu0 %v645_v23 }
  0xda   :  { %v594_v24 = vpop.f32.mrf.mxu1 }
  0xdc   :  { %v302_v25 = vpop.f32.mrf.mxu1 }
  0xde   :  { %v595_v28 = vpop.f32.mrf.mxu1 }
  0xe0   :  { %v305_v32 = vpop.f32.mrf.mxu1 }
  0xef   :  { %v564_v26 = vpop.f32.mrf.mxu0 }
  0xf1   :  { %v565_v27 = vpop.f32.mrf.mxu0 }
  0xf2   :  { %v566_v30 = vadd.f32 %v565_v27, %v564_v26 }
  0xf3   :  { %v567_v29 = vpop.f32.mrf.mxu0 }
  0xf4   :  { %v303_v35 = vadd.f32 %v566_v30, %v302_v25 }
  0xf5   :  { %v568_v31 = vpop.f32.mrf.mxu0 }
  0xf6   :  { %v569_v33 = vadd.f32 %v568_v31, %v567_v29 }
  0xf7   :  { %v570_v34 = vpop.f32.mrf.mxu0 }
  0xf8   :  { %v306_v36 = vadd.f32 %v569_v33, %v305_v32 }
  0xf9   :  { %v571_v37 = vpop.f32.mrf.mxu0 }
  0xfa   :  { %v317_v38 = vpack.c.bf16 %v306_v36, %v303_v35  ;;  %v572_v40 = vadd.f32 %v571_v37, %v570_v34 }
  0xfb   :  { %v573_v39 = vpop.f32.mrf.mxu0 }
  0xfc   :  { %600 = vmatprep.mubr.msk.bf16.mxu1 %vm212_vm0, %v317_v38  ;;  %v311_v43 = vadd.f32 %v594_v24, %v572_v40 }
  0xfd   :  { %v574_v41 = vpop.f32.mrf.mxu0 }
  0xfe   :  { %v575_v42 = vadd.f32 %v574_v41, %v573_v39 }
 0x100   :  { %v314_v44 = vadd.f32 %v595_v28, %v575_v42 }
 0x102   :  { %v318_v45 = vpack.c.bf16 %v314_v44, %v311_v43 }
 0x104   :  { %327 = vrot.lane.b32.xlu0 %v318_v45, %s709_s0 }
 0x108   :  { %325 = vrot.lane.b32.xlu0 %v317_v38, %s709_s0 }
 0x176   :  { %v328_v46 = vpop.permute.xlu0 %327 }
 0x177   :  { %v339_v47 = vsel %vm212_vm0, %v328_v46, 0  ;;  %612 = vmatprep.subr.msk.bf16.mxu1 %vm212_vm0, %v328_v46 }
 0x178   :  { %597 = vmatpush3.bf16.xpose.msra.mxu1 %v339_v47 }
 0x17a   :  { %v326_v48 = vpop.permute.xlu0 %325 }
 0x17b   :  { %613 = vmatprep.subr.msk.bf16.mxu1 %vm212_vm0, %v326_v48  ;;  %v336_v49 = vsel %vm212_vm0, %v326_v48, 0 }
 0x180   :  { %599 = vmatpush3.bf16.xpose.msra.mxu1 %v336_v49 }
 0x187   :  { %601 = vmatmul.mubr.msk.bf16.vlgmr.msra.gmra.mxu1 %vm212_vm0, %v318_v45 }
 0x247   :  { %v602_v51 = vpop.f32.mrf.mxu1 }
 0x248   :  { %v384_v53 = vadd.f32 %v602_v51, %v321_v50 }
 0x249   :  { %v375_v54 = vpop.f32.mrf.mxu1 }
 0x24a   :  { %v376_v55 = vadd.f32 %v375_v54, %v319_v52  ;;  %v396_v56 = vsel %vm212_vm0, %v384_v53, -inf }
 0x24b   :  { %397 = vmax.xlane.f32.xlu0 %v396_v56  ;;  %v603_v57 = vpop.f32.mrf.mxu1 }
 0x24c   :  { %v390_v59 = vsel %vm212_vm0, %v376_v55, -inf  ;;  %v387_v63 = vadd.f32 %v603_v57, %v322_v60 }
 0x24d   :  { %v378_v61 = vpop.f32.mrf.mxu1  ;;  %391 = vmax.xlane.f32.xlu1 %v390_v59 }
 0x24e   :  { %v379_v62 = vadd.f32 %v378_v61, %v320_v58  ;;  %v399_v1 = vsel %vm212_vm0, %v387_v63, -inf }
 0x250   :  { %v393_v0 = vsel %vm212_vm0, %v379_v62, -inf }
 0x251   :  { %394 = vmax.xlane.f32.xlu1 %v393_v0 }
 0x255   :  { %400 = vmax.xlane.f32.xlu1 %v399_v1 }
 0x261   :  { %436 = vrot.lane.b32.xlu0 %v317_v38, %s710_s1 }
 0x2d4   :  { %v398_v2 = vpop.xlane.xlu0 %397 }
 0x2d5   :  { %v404_v3 = vsub.f32 %v384_v53, %v398_v2 }
 0x2d6   :  { %v392_v4 = vpop.xlane.xlu1 %391 }
 0x2d7   :  { %v410_v5 = vmul.f32 1.442695, %v404_v3  ;;  %v402_v6 = vsub.f32 %v376_v55, %v392_v4 }
 0x2d8   :  { %v437_v27 = vpop.permute.xlu0 %436 }
 0x2d9   :  { %646 = vpow2.f32 %v410_v5  ;;  %v406_v7 = vmul.f32 1.442695, %v402_v6 }
 0x2da   :  { %v395_v8 = vpop.xlane.xlu1 %394 }
 0x2db   :  { %648 = vpow2.f32 %v406_v7  ;;  %v403_v9 = vsub.f32 %v379_v62, %v395_v8 }
 0x2dd   :  { %v408_v12 = vmul.f32 1.442695, %v403_v9 }
 0x2de   :  { %v401_v10 = vpop.xlane.xlu1 %400 }
 0x2df   :  { %v405_v11 = vsub.f32 %v387_v63, %v401_v10 }
 0x2e1   :  { %v412_v13 = vmul.f32 1.442695, %v405_v11 }
 0x2e3   :  { %650 = vpow2.f32 %v412_v13 }
 0x2e4   :  { %652 = vpow2.f32 %v408_v12 }
 0x2e6   :  { %v647_v14 = vpop.eup %646 }
 0x2e7   :  { %v420_v15 = vsel %vm212_vm0, %v647_v14, 0.0 }
 0x2e8   :  { %v649_v16 = vpop.eup %648  ;;  %421 = vadd.xlane.f32.xlu1 %v420_v15 }
 0x2e9   :  { %v414_v17 = vsel %vm212_vm0, %v649_v16, 0.0 }
 0x2ec   :  { %415 = vadd.xlane.f32.xlu1 %v414_v17 }
 0x2f0   :  { %v651_v18 = vpop.eup %650 }
 0x2f1   :  { %v423_v19 = vsel %vm212_vm0, %v651_v18, 0.0  ;;  %v653_v20 = vpop.eup %652 }
 0x2f2   :  { %424 = vadd.xlane.f32.xlu1 %v423_v19  ;;  %v417_v21 = vsel %vm212_vm0, %v653_v20, 0.0 }
 0x2f6   :  { %418 = vadd.xlane.f32.xlu1 %v417_v21 }
 0x307   :  { %438 = vrot.lane.b32.xlu1 %v318_v45, %s710_s1 }
 0x371   :  { %v422_v22 = vpop.xlane.xlu1 %421 }
 0x375   :  { %v416_v23 = vpop.xlane.xlu1 %415 }
 0x37b   :  { %v425_v24 = vpop.xlane.xlu1 %424 }
 0x37c   :  { %654 = vrcp.f32 %v425_v24 }
 0x37d   :  { %656 = vrcp.f32 %v416_v23 }
 0x37e   :  { %658 = vrcp.f32 %v422_v22 }
 0x37f   :  { %v419_v25 = vpop.xlane.xlu1 %418 }
 0x380   :  { %660 = vrcp.f32 %v419_v25 }
 0x383   :  { %v439_v26 = vpop.permute.xlu1 %438 }
 0x384   :  { %604 = vmatprep.subr.bf16.mxu1 %v439_v26 }
 0x385   :  { %605 = vmatpush3.bf16.msra.mxu1 %v439_v26 }
 0x386   :  { %606 = vmatprep.subr.bf16.mxu1 %v437_v27 }
 0x389   :  { %607 = vmatpush3.bf16.msra.mxu1 %v437_v27  ;;  %v655_v28 = vpop.eup %654 }
 0x38a   :  { %v657_v29 = vpop.eup %656  ;;  %v433_v32 = vmul.f32 %v655_v28, %v651_v18 }
 0x38b   :  { %v659_v30 = vpop.eup %658  ;;  %v427_v33 = vmul.f32 %v657_v29, %v649_v16 }
 0x38c   :  { %v431_v35 = vmul.f32 %v659_v30, %v647_v14 }
 0x38d   :  { %v661_v31 = vpop.eup %660 }
 0x38e   :  { %v429_v34 = vmul.f32 %v661_v31, %v653_v20  ;;  %v435_v37 = vpack.c.bf16 %v433_v32, %v431_v35 }
 0x390   :  { %v434_v36 = vpack.c.bf16 %v429_v34, %v427_v33 }
 0x392   :  { %608 = vmatprep.mubr.msk.bf16.mxu1 %vm212_vm0, %v434_v36 }
 0x393   :  { %609 = vmatmul.mubr.msk.bf16.vlgmr.msra.gmra.mxu1 %vm212_vm0, %v435_v37 }
 0x453   :  { %v610_v38 = vpop.f32.mrf.mxu1 }
 0x454   :  { %499 = vst.msk [vmem:[#allocation5 + $0x10] sm:$0xff] %vm212_vm0, %v610_v38 }
 0x455   :  { %v482_v39 = vpop.f32.mrf.mxu1 }
 0x456   :  { %497 = vst.msk [vmem:[#allocation5] sm:$0xff] %vm212_vm0, %v482_v39 }
 0x457   :  { %v611_v40 = vpop.f32.mrf.mxu1 }
 0x458   :  { %500 = vst.msk [vmem:[#allocation5 + $0x18] sm:$0xff] %vm212_vm0, %v611_v40 }
 0x459   :  { %v485_v41 = vpop.f32.mrf.mxu1 }
 0x45a   :  { %498 = vst.msk [vmem:[#allocation5 + $0x8] sm:$0xff] %vm212_vm0, %v485_v41 }
 0x45b   :  { %693 = shalt.err (!%p690_p9)
}
 0x45c   :  { %512 = dma.vmem_to_hbm [thread:$0]  %s507_s14, 512, %s841_s3, [#allocation4], %s707_s15, %s707_s15, %s708_s16  }
 0x45d   :  { %704 = dma.done.wait [#allocation4], 512  }
 0x45e   :  { %705 = vsyncadd [#allocation4], 4294966784 }
 0x45f   :  { %516 = vsyncpa [#allocation3], 1 }
 0x460   :  { %517 = vsyncpa [#allocation4], 1 }

</bundles_post_ra>
